<compile_context>
chip_gen: v6e
topology: v6e:2x2x1
jax: 0.10.0
libtpu: 0.0.40
codegen_flags: <defaults>
</compile_context>

<pallas_src>
import math

import numpy as np
import jax
import jax.numpy as jnp
from jax.experimental import pallas as pl
from jax.experimental.pallas import tpu as pltpu


# ----------------------------------------------------------------------------
# Parameter construction (deterministic, mirrors the shapes in __init__)
# ----------------------------------------------------------------------------

def dam_layer_dims(input_dim, output_dim, num_layers):
    """Replicates the dimension schedule from DAMGeneral.__init__."""
    ratio = max(input_dim / output_dim, output_dim / input_dim)
    coef = ratio ** (1.0 / num_layers)
    dims = []
    d = input_dim
    for _ in range(num_layers):
        if d * coef > output_dim:
            dims.append((d, output_dim))
            d = output_dim
        else:
            nd = math.ceil(d * coef)
            dims.append((d, nd))
            d = nd
    dims.append((d, output_dim))  # final Linear (no PReLU)
    return dims


def _linear_params(key, fan_in, fan_out):
    """PyTorch-nn.Linear-style uniform init, deterministic."""
    kw, kb = jax.random.split(key)
    bound = 1.0 / math.sqrt(fan_in)
    w = jax.random.uniform(kw, (fan_out, fan_in), jnp.float32, -bound, bound)
    b = jax.random.uniform(kb, (fan_out,), jnp.float32, -bound, bound)
    return w, b


def build_params(key, base_in=2, base_hidden=32, output_dim=10, num_layers=2):
    keys = jax.random.split(key, 2 + num_layers + 1)
    # base model: fc1 (base_in -> base_hidden), fc2 (base_hidden -> output_dim)
    w_fc1, b_fc1 = _linear_params(keys[0], base_in, base_hidden)
    w_fc2, b_fc2 = _linear_params(keys[1], base_hidden, output_dim)  # unused by dam_out

    dims = dam_layer_dims(base_hidden, output_dim, num_layers)
    dam_hidden = []  # list of (w, b, prelu_a)
    for i in range(num_layers):
        fin, fout = dims[i]
        w, b = _linear_params(keys[2 + i], fin, fout)
        a = jnp.full((1,), 0.25, jnp.float32)  # nn.PReLU() default
        dam_hidden.append((w, b, a))
    fin, fout = dims[-1]
    w_last, b_last = _linear_params(keys[2 + num_layers], fin, fout)

    return {
        "fc1": (w_fc1, b_fc1),
        "fc2": (w_fc2, b_fc2),          # dead for DAMGeneral.forward's return value
        "dam_hidden": dam_hidden,
        "dam_last": (w_last, b_last),
    }


# ----------------------------------------------------------------------------
# One-time parameter packing (hoisted out of the per-call path)
# ----------------------------------------------------------------------------

def prepare_dam_params(params):
    """Pack all Linear weights into one zero-padded slab (L, D, D), biases into
    one slab (D, L) and extract PReLU slopes as Python floats.  Done once on
    host with numpy (no per-forward XLA scatter chain)."""
    w_fc1, b_fc1 = params["fc1"]
    linears = [(w_fc1, b_fc1)]
    slopes = []
    for (w, b, a) in params["dam_hidden"]:
        linears.append((w, b))
        slopes.append(float(a[0]))
    linears.append(params["dam_last"])

    layer_dims = tuple((int(w.shape[0]), int(w.shape[1])) for (w, _) in linears)
    L = len(linears)
    D = max(max(o, i) for (o, i) in layer_dims)
    D = ((D + 7) // 8) * 8                              # sublane-align

    w_slab = np.zeros((L, D, D), np.float32)
    b_slab = np.zeros((D, L), np.float32)
    for idx, (w, b) in enumerate(linears):
        o, i = layer_dims[idx]
        w_slab[idx, :o, :i] = np.asarray(w, np.float32)
        b_slab[:o, idx] = np.asarray(b, np.float32)

    return {
        "w_slab": jnp.asarray(w_slab),
        "b_slab": jnp.asarray(b_slab),
        "layer_dims": layer_dims,
        "prelu": tuple(slopes),
        "D": D,
        "out_dim": layer_dims[-1][0],
    }


# ----------------------------------------------------------------------------
# Pallas kernel (batch-on-lanes layout: activations are (features, batch))
# ----------------------------------------------------------------------------

def make_dam_kernel(layer_dims, prelu_slopes, D, out_dim):
    """layer_dims: [(out, in)] for the linears in order:
       [0] base fc1 (-> ReLU = feats), [1..L-2] DAM hidden (-> PReLU), [L-1] final.
       The whole chain runs at the padded (D, tile_b) activation shape; padded
       rows stay exactly zero (zero weights/bias, ReLU(0)=0, PReLU(0)=0)."""
    n_linear = len(layer_dims)
    out0, in0 = layer_dims[0]

    def kernel(x_ref, w_ref, b_ref, o_ref):
        x = x_ref[...]                                  # (in0, tile_b), lane-dense
        b0 = b_ref[:, 0:1]                              # (D, 1) ref-window load

        # ---- base model hot path: feats = relu(W1 @ x + b1), padded to D ----
        if in0 <= 4:
            # Degenerate contraction (K<=4): VPU broadcast-FMAs, no MXU pass.
            w0 = w_ref[0]                               # (D, D) zero-padded
            h = b0 + w0[:, 0:1] * x[0:1, :]
            for k in range(1, in0):
                h = h + w0[:, k:k + 1] * x[k:k + 1, :]
        else:
            h = jnp.dot(w_ref[0][:, :in0], x,
                        preferred_element_type=jnp.float32) + b0
        h = jnp.maximum(h, 0.0)                         # ReLU -> feats (D, tile_b)

        # ---- DAM head: one uniform (D,D)x(D,tile_b) MXU matmul per layer ----
        for li in range(1, n_linear):
            h = jnp.dot(w_ref[li], h, preferred_element_type=jnp.float32)
            h = h + b_ref[:, li:li + 1]                 # (D, 1) ref-window load
            if li < n_linear - 1:                       # hidden layer -> PReLU
                a = prelu_slopes[li - 1]                # host-known Python float
                if 0.0 < a < 1.0:
                    h = jnp.maximum(h, a * h)           # 2 VALU ops/elem
                else:
                    h = jnp.where(h >= 0, h, a * h)

        # Slice to the real output rows only at the final store.
        o_ref[...] = h[:out_dim, :].astype(o_ref.dtype)

    return kernel


def _choose_tile_b(Bp, max_tile=8192):
    """Collapse the grid: one step for small batches, few lane-aligned steps
    for huge ones (only then do multiple 'parallel' steps pay off)."""
    if Bp <= max_tile:
        return Bp
    steps = -(-Bp // max_tile)
    while Bp % steps != 0 or (Bp // steps) % 128 != 0:
        steps += 1
    return Bp // steps


def dam_general_forward_fb(x_t, packed, *, max_tile_b=8192):
    """DAMGeneral.forward in (features, batch) layout.

    x_t: (base_in, Bp) with Bp % 128 == 0.  Returns dam_out as (out_dim, Bp).
    No per-call packing / padding / transposes."""
    in0, Bp = x_t.shape
    assert Bp % 128 == 0, "batch (lane) extent must be a multiple of 128"
    layer_dims = packed["layer_dims"]
    assert layer_dims[0][1] == in0
    D = packed["D"]
    L = len(layer_dims)
    out_dim = packed["out_dim"]

    tile_b = _choose_tile_b(Bp, max_tile_b)
    grid = (Bp // tile_b,)

    flops = 2 * Bp * sum(o * i for (o, i) in layer_dims)
    bytes_accessed = 4 * (Bp * (in0 + out_dim) + L * D * D + D * L)

    return pl.pallas_call(
        make_dam_kernel(layer_dims, packed["prelu"], D, out_dim),
        out_shape=jax.ShapeDtypeStruct((out_dim, Bp), jnp.float32),
        grid=grid,
        in_specs=[
            pl.BlockSpec((in0, tile_b), lambda i: (0, i)),       # x tile (lane-dense)
            pl.BlockSpec((L, D, D), lambda i: (0, 0, 0)),        # weight slab (resident)
            pl.BlockSpec((D, L), lambda i: (0, 0)),              # bias slab (resident)
        ],
        out_specs=pl.BlockSpec((out_dim, tile_b), lambda i: (0, i)),
        compiler_params=pltpu.CompilerParams(dimension_semantics=("parallel",)),
        cost_estimate=pl.CostEstimate(flops=flops, transcendentals=0,
                                      bytes_accessed=bytes_accessed),
    )(x_t, packed["w_slab"], packed["b_slab"])


def dam_general_forward(x, packed, **kw):
    """Convenience wrapper keeping the PyTorch (B, in) -> (B, out) interface.
    Pads the batch only to the next multiple of 128 and only when needed."""
    B, in0 = x.shape
    Bp = ((B + 127) // 128) * 128
    if Bp == B:
        x_t = x.T.astype(jnp.float32)
    else:
        x_t = jnp.zeros((in0, Bp), jnp.float32).at[:, :B].set(x.T.astype(jnp.float32))
    out_t = dam_general_forward_fb(x_t, packed, **kw)
    return out_t[:, :B].T


# ----------------------------------------------------------------------------
# Pure-JAX reference (for verification)
# ----------------------------------------------------------------------------

def dam_general_ref(x, params):
    w_fc1, b_fc1 = params["fc1"]
    h = jnp.maximum(x @ w_fc1.T + b_fc1, 0.0)   # feats
    for (w, b, a) in params["dam_hidden"]:
        h = h @ w.T + b
        h = jnp.where(h >= 0, h, a[0] * h)
    w_last, b_last = params["dam_last"]
    return h @ w_last.T + b_last


# ----------------------------------------------------------------------------

if __name__ == "__main__":
    key = jax.random.PRNGKey(0)
    kx, kp = jax.random.split(key)

    batch, base_in = 512, 2                     # 512 % 128 == 0 -> grid = (1,)
    x = jax.random.normal(kx, (batch, base_in), jnp.float32)
    params = build_params(kp, base_in=base_in, base_hidden=32,
                          output_dim=10, num_layers=2)

    # One-time host-side parameter packing (hoisted out of the forward path).
    packed = prepare_dam_params(params)

    # Steady-state path: (features, batch) in / out, single pallas_call.
    forward_fb = jax.jit(lambda xt: dam_general_forward_fb(xt, packed))
    out_t = jax.block_until_ready(forward_fb(x.T))   # (out_dim, batch)

    out = out_t.T                                     # back to (B, out_dim) for checking
    ref = dam_general_ref(x, params)
    assert out.shape == (batch, 10)
    assert jnp.allclose(out, ref, atol=5e-4, rtol=5e-4), \
        float(jnp.max(jnp.abs(out - ref)))

    # Also exercise the PyTorch-style (B, in) convenience wrapper once.
    out2 = jax.block_until_ready(dam_general_forward(x, packed))
    assert jnp.allclose(out2, ref, atol=5e-4, rtol=5e-4)

    print("KERNEL_OK")
</pallas_src>

<mosaic_0001>
module attributes {stable_mosaic.version = 11 : i64} {
  func.func @kernel(%arg0: i32, %arg1: memref<2x512xf32, #tpu.memory_space<vmem>>, %arg2: memref<4x32x32xf32, #tpu.memory_space<vmem>>, %arg3: memref<32x4xf32, #tpu.memory_space<vmem>>, %arg4: memref<10x512xf32, #tpu.memory_space<vmem>>) attributes {dimension_semantics = [#tpu.dimension_semantics<parallel>], iteration_bounds = array<i64: 1>, scalar_prefetch = 0 : i64, scratch_operands = 0 : i64, tpu.core_type = #tpu.core_type<tc>, window_params = [{transform_indices = @transform_0, window_bounds = array<i64: 2, 512>}, {pipeline_mode = #tpu.pipeline_mode<synchronous>, transform_indices = @transform_1, window_bounds = array<i64: 4, 32, 32>}, {pipeline_mode = #tpu.pipeline_mode<synchronous>, transform_indices = @transform_2, window_bounds = array<i64: 32, 4>}, {transform_indices = @transform_3, window_bounds = array<i64: 10, 512>}]} {
    %c0 = arith.constant 0 : index
    %c0_0 = arith.constant 0 : index
    %0 = vector.load %arg1[%c0, %c0_0] : memref<2x512xf32, #tpu.memory_space<vmem>>, vector<2x512xf32>
    %c0_1 = arith.constant 0 : index
    %c0_2 = arith.constant 0 : index
    %1 = vector.load %arg3[%c0_1, %c0_2] : memref<32x4xf32, #tpu.memory_space<vmem>>, vector<32x1xf32>
    %c0_3 = arith.constant 0 : index
    %c0_4 = arith.constant 0 : index
    %c0_5 = arith.constant 0 : index
    %2 = vector.load %arg2[%c0_3, %c0_4, %c0_5] : memref<4x32x32xf32, #tpu.memory_space<vmem>>, vector<1x32x32xf32>
    %3 = vector.shape_cast %2 : vector<1x32x32xf32> to vector<32x32xf32>
    %4 = vector.extract_strided_slice %3 {offsets = [0, 0], sizes = [32, 1], strides = [1, 1]} : vector<32x32xf32> to vector<32x1xf32>
    %5 = vector.extract_strided_slice %0 {offsets = [0, 0], sizes = [1, 512], strides = [1, 1]} : vector<2x512xf32> to vector<1x512xf32>
    %6 = vector.broadcast %4 : vector<32x1xf32> to vector<32x512xf32>
    %7 = vector.broadcast %5 : vector<1x512xf32> to vector<32x512xf32>
    %8 = arith.mulf %6, %7 : vector<32x512xf32>
    %9 = vector.broadcast %1 : vector<32x1xf32> to vector<32x512xf32>
    %10 = arith.addf %9, %8 : vector<32x512xf32>
    %11 = vector.extract_strided_slice %3 {offsets = [0, 1], sizes = [32, 1], strides = [1, 1]} : vector<32x32xf32> to vector<32x1xf32>
    %12 = vector.extract_strided_slice %0 {offsets = [1, 0], sizes = [1, 512], strides = [1, 1]} : vector<2x512xf32> to vector<1x512xf32>
    %13 = vector.broadcast %11 : vector<32x1xf32> to vector<32x512xf32>
    %14 = vector.broadcast %12 : vector<1x512xf32> to vector<32x512xf32>
    %15 = arith.mulf %13, %14 : vector<32x512xf32>
    %16 = arith.addf %10, %15 : vector<32x512xf32>
    %cst = arith.constant 0.000000e+00 : f32
    %17 = vector.broadcast %cst : f32 to vector<32x512xf32>
    %18 = arith.maximumf %16, %17 : vector<32x512xf32>
    %c1 = arith.constant 1 : index
    %c0_6 = arith.constant 0 : index
    %c0_7 = arith.constant 0 : index
    %19 = vector.load %arg2[%c1, %c0_6, %c0_7] : memref<4x32x32xf32, #tpu.memory_space<vmem>>, vector<1x32x32xf32>
    %20 = vector.shape_cast %19 : vector<1x32x32xf32> to vector<32x32xf32>
    %cst_8 = arith.constant dense<0.000000e+00> : vector<32x512xf32>
    %21 = tpu.matmul %20, %18, %cst_8 {dimension_numbers = #tpu.dot_dimension_numbers<[1], [0], [0], [1], [0, 0, 1, 1], [], []>} : vector<32x32xf32>, vector<32x512xf32>, vector<32x512xf32> -> vector<32x512xf32>
    %c0_9 = arith.constant 0 : index
    %c1_10 = arith.constant 1 : index
    %22 = vector.load %arg3[%c0_9, %c1_10] : memref<32x4xf32, #tpu.memory_space<vmem>>, vector<32x1xf32>
    %23 = vector.broadcast %22 : vector<32x1xf32> to vector<32x512xf32>
    %24 = arith.addf %21, %23 : vector<32x512xf32>
    %cst_11 = arith.constant 2.500000e-01 : f32
    %25 = vector.broadcast %cst_11 : f32 to vector<32x512xf32>
    %26 = arith.mulf %25, %24 : vector<32x512xf32>
    %27 = arith.maximumf %24, %26 : vector<32x512xf32>
    %c2 = arith.constant 2 : index
    %c0_12 = arith.constant 0 : index
    %c0_13 = arith.constant 0 : index
    %28 = vector.load %arg2[%c2, %c0_12, %c0_13] : memref<4x32x32xf32, #tpu.memory_space<vmem>>, vector<1x32x32xf32>
    %29 = vector.shape_cast %28 : vector<1x32x32xf32> to vector<32x32xf32>
    %cst_14 = arith.constant dense<0.000000e+00> : vector<32x512xf32>
    %30 = tpu.matmul %29, %27, %cst_14 {dimension_numbers = #tpu.dot_dimension_numbers<[1], [0], [0], [1], [0, 0, 1, 1], [], []>} : vector<32x32xf32>, vector<32x512xf32>, vector<32x512xf32> -> vector<32x512xf32>
    %c0_15 = arith.constant 0 : index
    %c2_16 = arith.constant 2 : index
    %31 = vector.load %arg3[%c0_15, %c2_16] : memref<32x4xf32, #tpu.memory_space<vmem>>, vector<32x1xf32>
    %32 = vector.broadcast %31 : vector<32x1xf32> to vector<32x512xf32>
    %33 = arith.addf %30, %32 : vector<32x512xf32>
    %cst_17 = arith.constant 2.500000e-01 : f32
    %34 = vector.broadcast %cst_17 : f32 to vector<32x512xf32>
    %35 = arith.mulf %34, %33 : vector<32x512xf32>
    %36 = arith.maximumf %33, %35 : vector<32x512xf32>
    %c3 = arith.constant 3 : index
    %c0_18 = arith.constant 0 : index
    %c0_19 = arith.constant 0 : index
    %37 = vector.load %arg2[%c3, %c0_18, %c0_19] : memref<4x32x32xf32, #tpu.memory_space<vmem>>, vector<1x32x32xf32>
    %38 = vector.shape_cast %37 : vector<1x32x32xf32> to vector<32x32xf32>
    %cst_20 = arith.constant dense<0.000000e+00> : vector<32x512xf32>
    %39 = tpu.matmul %38, %36, %cst_20 {dimension_numbers = #tpu.dot_dimension_numbers<[1], [0], [0], [1], [0, 0, 1, 1], [], []>} : vector<32x32xf32>, vector<32x512xf32>, vector<32x512xf32> -> vector<32x512xf32>
    %c0_21 = arith.constant 0 : index
    %c3_22 = arith.constant 3 : index
    %40 = vector.load %arg3[%c0_21, %c3_22] : memref<32x4xf32, #tpu.memory_space<vmem>>, vector<32x1xf32>
    %41 = vector.broadcast %40 : vector<32x1xf32> to vector<32x512xf32>
    %42 = arith.addf %39, %41 : vector<32x512xf32>
    %43 = vector.extract_strided_slice %42 {offsets = [0, 0], sizes = [10, 512], strides = [1, 1]} : vector<32x512xf32> to vector<10x512xf32>
    %c0_23 = arith.constant 0 : index
    %c0_24 = arith.constant 0 : index
    %44 = vector.load %arg4[%c0_23, %c0_24] : memref<10x512xf32, #tpu.memory_space<vmem>>, vector<10x512xf32>
    tpu.vector_store %arg4[%c0_23, %c0_24], %43 {strides = array<i32>} : memref<10x512xf32, #tpu.memory_space<vmem>>, vector<10x512xf32>,
    return
  }
  func.func @transform_0(%arg0: i32) -> (i32, i32) {
    %c0_i32 = arith.constant 0 : i32
    %c0_i32_0 = arith.constant 0 : i32
    return %c0_i32, %arg0 : i32, i32
  }
  func.func @transform_1(%arg0: i32) -> (i32, i32, i32) {
    %c0_i32 = arith.constant 0 : i32
    %c0_i32_0 = arith.constant 0 : i32
    %c0_i32_1 = arith.constant 0 : i32
    %c0_i32_2 = arith.constant 0 : i32
    return %c0_i32, %c0_i32_0, %c0_i32_1 : i32, i32, i32
  }
  func.func @transform_2(%arg0: i32) -> (i32, i32) {
    %c0_i32 = arith.constant 0 : i32
    %c0_i32_0 = arith.constant 0 : i32
    %c0_i32_1 = arith.constant 0 : i32
    return %c0_i32, %c0_i32_0 : i32, i32
  }
  func.func @transform_3(%arg0: i32) -> (i32, i32) {
    %c0_i32 = arith.constant 0 : i32
    %c0_i32_0 = arith.constant 0 : i32
    return %c0_i32, %arg0 : i32, i32
  }
}

</mosaic_0001>

<bundles_post_ra>
// kernel: _lambda_.1
= control target key start
LH: loop header
LB: loop body
LE: loop exit
PB: predicated region body
PF: predicated region fallthrough
CT: control target
= control target key end

     0   :  { %8 = vsyncpa [#allocation3], 0  ;;  %s1290_s0 = inlined_call_operand.hbm [shape: f32[2,512], index: 0, kind: input, shape index: {}]   ;;  %s1291_s1 = inlined_call_operand.hbm [shape: f32[4,32,32], index: 1, kind: input, shape index: {}]   ;;  %s1292_s2 = inlined_call_operand.hbm [shape: f32[32,4], index: 2, kind: input, shape index: {}]   ;;  %s1293_s3 = inlined_call_operand.hbm [shape: f32[10,512], index: 3, kind: output, shape index: {}]  }
   0x1   :  { %9 = vsyncpa [#allocation6], 0 }
   0x2   :  { %10 = vsyncpa [#allocation4], 0  ;;  %s1119_s12 = smov [#allocation5]  }
   0x3   :  { %s26_s13 = sshll.u32 %s1119_s12, 4  ;;  %s27_s13 = int_to_ptr.vmem [resolvable:$true] %s26_s13 }
   0x4   :  { %s1041_s14 = scalar_lea.vmem %s27_s13, 2048  ;;  %p1046_p1 = scmp.lt.s32.totalorder %s27_s13, %s27_s13 }
   0x5   :  { %p1042_p0 = scmp.ne.s32.totalorder %s27_s13, %s1041_s14  ;;  %p1047_p2 = scmp.lt.s32.totalorder %s1041_s14, %s1041_s14 }
   0x7   :  { %p1048_p3 = por %p1047_p2, %p1046_p1 }
   0x9   :  { %p1049_p4 = pnand %p1048_p3, %p1042_p0 }
   0xb   :  { %1052 = shalt.err (!%p1049_p4)
}
   0xc   :  { %s1120_s15 = smov 128   ;;  %s1121_s16 = smov 8  }
   0xd   :  { %32 = dma.hbm_to_vmem [thread:$0]  %s1291_s1, 2048, %s27_s13, [#allocation6], %s1120_s15, %s1120_s15, %s1121_s16  }
   0xe   :  { %s1122_s19 = smov [#allocation2]   ;;  %s1123_s21 = smov [#allocation7]  }
   0xf   :  { %s17_s20 = sshll.u32 %s1122_s19, 4  ;;  %s38_s22 = sshll.u32 %s1123_s21, 4  ;;  %s18_s20 = int_to_ptr.vmem [resolvable:$true] %s17_s20  ;;  %s39_s22 = int_to_ptr.vmem [resolvable:$true] %s38_s22 }
  0x10   :  { %s1061_s23 = scalar_lea.vmem %s18_s20, 128  ;;  %p1066_p6 = scmp.lt.s32.totalorder %s18_s20, %s18_s20 }
  0x11   :  { %p1062_p5 = scmp.ne.s32.totalorder %s18_s20, %s1061_s23  ;;  %p1067_p7 = scmp.lt.s32.totalorder %s1061_s23, %s1061_s23 }
  0x13   :  { %p1068_p8 = por %p1067_p7, %p1066_p6 }
  0x15   :  { %p1069_p9 = pnand %p1068_p8, %p1062_p5 }
  0x17   :  { %1072 = shalt.err (!%p1069_p9)
}
  0x18   :  { %20 = dma.hbm_to_vmem [thread:$0]  %s1290_s0, 128, %s18_s20, [#allocation3]  }
  0x19   :  { %s1081_s26 = scalar_lea.vmem %s39_s22, 512  ;;  %p1086_p11 = scmp.lt.s32.totalorder %s39_s22, %s39_s22 }
  0x1a   :  { %p1082_p10 = scmp.ne.s32.totalorder %s39_s22, %s1081_s26  ;;  %p1087_p12 = scmp.lt.s32.totalorder %s1081_s26, %s1081_s26 }
  0x1c   :  { %p1088_p13 = por %p1087_p12, %p1086_p11 }
  0x1e   :  { %p1089_p0 = pnand %p1088_p13, %p1082_p10 }
  0x20   :  { %1092 = shalt.err (!%p1089_p0)
}
  0x21   :  { %44 = dma.hbm_to_vmem [thread:$0]  %s1292_s2, 512, %s39_s22, [#allocation6], %s1120_s15, %s1120_s15, %s1121_s16  }
  0x22   :  { %1113 = dma.done.wait [#allocation3], 128  }
  0x23   :  { %1114 = vsyncadd [#allocation3], 4294967168 }
  0x24   :  { %1115 = dma.done.wait [#allocation6], 2560  }
  0x25   :  { %1116 = vsyncadd [#allocation6], 4294964736  ;;  %v1124_v0 = vmov 0   ;;  %v62_v1 = vld [vmem:[#allocation5 + $0x18] sm:$0xff]  ;;  %v61_v3 = vld [vmem:[#allocation5 + $0x10] sm:$0xff]  ;;  %v1125_v4 = vmov 1   ;;  %v84_v11 = vlaneseq }
  0x26   :  { %1024 = vset.pattern.permute.xlu1 %v1124_v0  ;;  %1023 = vset.pattern.permute.xlu0 %v1124_v0  ;;  %v1161_v2 = vld [vmem:[#allocation7 + $0x18] sm:$0xff]  ;;  %v60_v5 = vld [vmem:[#allocation5 + $0x8] sm:$0xff]  ;;  %v1164_v6 = vld [vmem:[#allocation7 + $0x10] sm:$0xff]  ;;  %v1126_v10 = vmov 0.0   ;;  %vm293_vm0 = vcmask 261120   ;;  %s1129_s0 = smov [#allocation8]  }
  0x27   :  { %80 = vperm.xlu0 %1023, %v62_v1   ;;  %153 = vperm.xlu1 %1024, %v1161_v2   ;;  %v59_v7 = vld [vmem:[#allocation5] sm:$0xff]  ;;  %v1167_v8 = vld [vmem:[#allocation7 + $0x8] sm:$0xff]  ;;  %v85_v12 = vshrl.u32 %v84_v11, 7  ;;  %v54_v17 = vld [vmem:[#allocation2] sm:$0xff]  ;;  %s973_s2 = sshll.u32 %s1129_s0, 4  ;;  %s974_s2 = int_to_ptr.vmem [resolvable:$true] %s973_s2 }
  0x28   :  { %v1170_v9 = vld [vmem:[#allocation7] sm:$0xff]  ;;  %370 = vmatprep.mubr.f32.mxu0 %v1126_v10  ;;  %459 = vmatprep.mubr.f32.mxu1 %v1126_v10  ;;  %s1093_s28 = scalar_lea.vmem %s974_s2, 1024  ;;  %p1098_p2 = scmp.lt.s32.totalorder %s974_s2, %s974_s2 }
  0x29   :  { %v86_v13 = vsub.s32 0, %v85_v12  ;;  %v94_v14 = vsub.s32 4, %v85_v12  ;;  %v90_v15 = vsub.s32 2, %v85_v12  ;;  %v98_v16 = vsub.s32 6, %v85_v12  ;;  %p1094_p1 = scmp.ne.s32.totalorder %s974_s2, %s1093_s28  ;;  %p1099_p3 = scmp.lt.s32.totalorder %s1093_s28, %s1093_s28 }
  0x2a   :  { %v190_v22 = vsub.s32 1, %v85_v12  ;;  %v194_v23 = vsub.s32 3, %v85_v12  ;;  %v202_v24 = vsub.s32 7, %v85_v12  ;;  %v198_v25 = vsub.s32 5, %v85_v12 }
  0x2b   :  { %75 = vperm.xlu0 %1023, %v61_v3   ;;  %1025 = vset.pattern.permute.xlu1 %v1125_v4  ;;  %v87_v18 = vrot.slane %v54_v17, %v86_v13  ;;  %v95_v19 = vrot.slane %v54_v17, %v94_v14  ;;  %v91_v20 = vrot.slane %v54_v17, %v90_v15  ;;  %p1100_p4 = por %p1099_p3, %p1098_p2 }
  0x2c   :  { %185 = vperm.xlu1 %1025, %v62_v1   ;;  %v99_v21 = vrot.slane %v54_v17, %v98_v16  ;;  %v195_v30 = vrot.slane %v54_v17, %v194_v23  ;;  %v203_v31 = vrot.slane %v54_v17, %v202_v24  ;;  %v191_v32 = vrot.slane %v54_v17, %v190_v22 }
  0x2d   :  { %v1179_v26 = vrot.slane %v87_v18, %v86_v13  ;;  %v1181_v27 = vrot.slane %v95_v19, %v86_v13  ;;  %v1183_v28 = vrot.slane %v91_v20, %v86_v13  ;;  %v199_v33 = vrot.slane %v54_v17, %v198_v25  ;;  %p1101_p5 = pnand %p1100_p4, %p1094_p1 }
  0x2e   :  { %v1185_v29 = vrot.slane %v99_v21, %v86_v13  ;;  %v1191_v40 = vrot.slane %v195_v30, %v190_v22  ;;  %v1193_v41 = vrot.slane %v203_v31, %v190_v22  ;;  %v1195_v42 = vrot.slane %v191_v32, %v190_v22 }
  0x2f   :  { %70 = vperm.xlu0 %1023, %v60_v5   ;;  %v1197_v43 = vrot.slane %v199_v33, %v190_v22 }
  0x30   :  { %1026 = vset.pattern.permute.xlu1 %v1124_v0 }
  0x31   :  { %148 = vperm.xlu1 %1026, %v1164_v6  }
  0x33   :  { %1027 = vset.pattern.permute.xlu0 %v1125_v4 }
  0x34   :  { %181 = vperm.xlu0 %1027, %v61_v3  }
  0x35   :  { %65 = vperm.xlu1 %1026, %v59_v7  }
  0x38   :  { %177 = vperm.xlu0 %1027, %v60_v5  }
  0x39   :  { %143 = vperm.xlu1 %1026, %v1167_v8  }
  0x3c   :  { %173 = vperm.xlu0 %1027, %v59_v7  }
  0x3d   :  { %138 = vperm.xlu1 %1026, %v1170_v9  }
  0x40   :  { %286 = vperm.xlu0 %1027, %v1164_v6  }
  0x41   :  { %1028 = vset.pattern.permute.xlu1 %v1125_v4 }
  0x42   :  { %290 = vperm.xlu1 %1028, %v1161_v2  }
  0x44   :  { %278 = vperm.xlu0 %1027, %v1170_v9  }
  0x46   :  { %282 = vperm.xlu1 %1028, %v1167_v8  }
  0xa2   :  { %v81_v34 = vpop.permute.xlu0 %80  ;;  %v154_v35 = vpop.permute.xlu1 %153 }
  0xa3   :  { %v132_v36 = vmul.f32 %v1179_v26, %v81_v34  ;;  %v134_v37 = vmul.f32 %v1181_v27, %v81_v34  ;;  %v133_v38 = vmul.f32 %v1183_v28, %v81_v34  ;;  %v135_v39 = vmul.f32 %v1185_v29, %v81_v34 }
  0xa5   :  { %v169_v46 = vadd.f32 %v154_v35, %v133_v38  ;;  %v171_v47 = vadd.f32 %v154_v35, %v135_v39  ;;  %v168_v48 = vadd.f32 %v154_v35, %v132_v36  ;;  %v170_v49 = vadd.f32 %v154_v35, %v134_v37 }
  0xa6   :  { %v76_v44 = vpop.permute.xlu0 %75 }
  0xa7   :  { %v186_v45 = vpop.permute.xlu1 %185  ;;  %v128_v59 = vmul.f32 %v1179_v26, %v76_v44  ;;  %v129_v1 = vmul.f32 %v1183_v28, %v76_v44  ;;  %v130_v3 = vmul.f32 %v1181_v27, %v76_v44  ;;  %v131_v4 = vmul.f32 %v1185_v29, %v76_v44 }
  0xa8   :  { %v237_v50 = vmul.f32 %v1191_v40, %v186_v45  ;;  %v239_v51 = vmul.f32 %v1193_v41, %v186_v45  ;;  %v236_v52 = vmul.f32 %v1195_v42, %v186_v45  ;;  %v238_v53 = vmul.f32 %v1197_v43, %v186_v45 }
  0xaa   :  { %v71_v54 = vpop.permute.xlu0 %70  ;;  %v253_v55 = vadd.f32 %v237_v50, %v169_v46  ;;  %v255_v56 = vadd.f32 %v239_v51, %v171_v47  ;;  %v252_v57 = vadd.f32 %v236_v52, %v168_v48  ;;  %v254_v58 = vadd.f32 %v238_v53, %v170_v49 }
  0xab   :  { %v124_v19 = vmul.f32 %v1179_v26, %v71_v54  ;;  %v125_v20 = vmul.f32 %v1183_v28, %v71_v54  ;;  %v126_v21 = vmul.f32 %v1181_v27, %v71_v54  ;;  %v127_v22 = vmul.f32 %v1185_v29, %v71_v54 }
  0xac   :  { %v149_v60 = vpop.permute.xlu1 %148  ;;  %v269_v61 = vmax.f32 %v253_v55, 0.0  ;;  %v271_v62 = vmax.f32 %v255_v56, 0.0  ;;  %v268_v63 = vmax.f32 %v252_v57, 0.0  ;;  %v270_v0 = vmax.f32 %v254_v58, 0.0 }
  0xad   :  { %v164_v5 = vadd.f32 %v149_v60, %v128_v59  ;;  %v165_v7 = vadd.f32 %v149_v60, %v129_v1  ;;  %v166_v11 = vadd.f32 %v149_v60, %v130_v3  ;;  %v167_v12 = vadd.f32 %v149_v60, %v131_v4 }
  0xae   :  { %330 = vmatprep.subr.mxu0 %v269_v61  ;;  %419 = vmatprep.subr.mxu1 %v271_v62 }
  0xaf   :  { %v182_v13 = vpop.permute.xlu0 %181  ;;  %331 = vmatpush1.msra.mxu0 %v268_v63  ;;  %420 = vmatpush1.msra.mxu1 %v270_v0 }
  0xb0   :  { %v232_v14 = vmul.f32 %v1195_v42, %v182_v13  ;;  %v233_v15 = vmul.f32 %v1191_v40, %v182_v13  ;;  %v234_v16 = vmul.f32 %v1197_v43, %v182_v13  ;;  %v235_v17 = vmul.f32 %v1193_v41, %v182_v13  ;;  %v66_v18 = vpop.permute.xlu1 %65  ;;  %v274_v13 = vld [vmem:[#allocation5 + $0x28] sm:$0xff] }
  0xb1   :  { %v120_v31 = vmul.f32 %v1179_v26, %v66_v18  ;;  %v121_v32 = vmul.f32 %v1183_v28, %v66_v18  ;;  %v122_v33 = vmul.f32 %v1181_v27, %v66_v18  ;;  %v123_v34 = vmul.f32 %v1185_v29, %v66_v18 }
  0xb2   :  { %v249_v23 = vadd.f32 %v233_v15, %v165_v7  ;;  %v251_v24 = vadd.f32 %v235_v17, %v167_v12  ;;  %v248_v25 = vadd.f32 %v232_v14, %v164_v5  ;;  %v250_v30 = vadd.f32 %v234_v16, %v166_v11  ;;  %v273_v12 = vld [vmem:[#allocation5 + $0x20] sm:$0xff]  ;;  %v275_v14 = vld [vmem:[#allocation5 + $0x30] sm:$0xff]  ;;  %v276_v15 = vld [vmem:[#allocation5 + $0x38] sm:$0xff] }
  0xb3   :  { %v178_v35 = vpop.permute.xlu0 %177  ;;  %v1127_v16 = vmov 2  }
  0xb4   :  { %v228_v36 = vmul.f32 %v1195_v42, %v178_v35  ;;  %v229_v37 = vmul.f32 %v1191_v40, %v178_v35  ;;  %v230_v38 = vmul.f32 %v1197_v43, %v178_v35  ;;  %v231_v39 = vmul.f32 %v1193_v41, %v178_v35  ;;  %v144_v44 = vpop.permute.xlu1 %143  ;;  %1029 = vset.pattern.permute.xlu1 %v1127_v16 }
  0xb5   :  { %v160_v45 = vadd.f32 %v144_v44, %v124_v19  ;;  %v161_v46 = vadd.f32 %v144_v44, %v125_v20  ;;  %v162_v47 = vadd.f32 %v144_v44, %v126_v21  ;;  %v163_v26 = vadd.f32 %v144_v44, %v127_v22  ;;  %1030 = vset.pattern.permute.xlu0 %v1127_v16 }
  0xb6   :  { %v265_v48 = vmax.f32 %v249_v23, 0.0  ;;  %v267_v28 = vmax.f32 %v251_v24, 0.0  ;;  %v264_v49 = vmax.f32 %v248_v25, 0.0  ;;  %v266_v27 = vmax.f32 %v250_v30, 0.0  ;;  %534 = vperm.xlu1 %1029, %v1161_v2   ;;  %530 = vperm.xlu0 %1030, %v1164_v6  }
  0xb7   :  { %v174_v50 = vpop.permute.xlu0 %173  ;;  %v245_v29 = vadd.f32 %v229_v37, %v161_v46  ;;  %v247_v51 = vadd.f32 %v231_v39, %v163_v26  ;;  %v244_v52 = vadd.f32 %v228_v36, %v160_v45  ;;  %v246_v53 = vadd.f32 %v230_v38, %v162_v47 }
  0xb8   :  { %332 = vmatprep.subr.mxu0 %v265_v48  ;;  %421 = vmatprep.subr.mxu1 %v267_v28  ;;  %v224_v54 = vmul.f32 %v1195_v42, %v174_v50  ;;  %v225_v55 = vmul.f32 %v1191_v40, %v174_v50  ;;  %v226_v56 = vmul.f32 %v1197_v43, %v174_v50  ;;  %v139_v57 = vpop.permute.xlu1 %138 }
  0xb9   :  { %v227_v58 = vmul.f32 %v1193_v41, %v174_v50  ;;  %333 = vmatpush1.msra.mxu0 %v264_v49  ;;  %422 = vmatpush1.msra.mxu1 %v266_v27  ;;  %v156_v59 = vadd.f32 %v139_v57, %v120_v31  ;;  %v157_v60 = vadd.f32 %v139_v57, %v121_v32  ;;  %v261_v61 = vmax.f32 %v245_v29, 0.0 }
  0xba   :  { %v158_v62 = vadd.f32 %v139_v57, %v122_v33  ;;  %v159_v63 = vadd.f32 %v139_v57, %v123_v34  ;;  %v263_v0 = vmax.f32 %v247_v51, 0.0  ;;  %v260_v1 = vmax.f32 %v244_v52, 0.0  ;;  %526 = vperm.xlu1 %1029, %v1167_v8  }
  0xbb   :  { %334 = vmatprep.subr.mxu0 %v261_v61  ;;  %v262_v3 = vmax.f32 %v246_v53, 0.0  ;;  %v241_v4 = vadd.f32 %v225_v55, %v157_v60  ;;  %v240_v42 = vadd.f32 %v224_v54, %v156_v59  ;;  %v287_v23 = vpop.permute.xlu0 %286 }
  0xbc   :  { %423 = vmatprep.subr.mxu1 %v263_v0  ;;  %335 = vmatpush1.msra.mxu0 %v260_v1  ;;  %v243_v40 = vadd.f32 %v227_v58, %v159_v63  ;;  %v242_v43 = vadd.f32 %v226_v56, %v158_v62 }
  0xbd   :  { %424 = vmatpush1.msra.mxu1 %v262_v3  ;;  %v257_v5 = vmax.f32 %v241_v4, 0.0  ;;  %v256_v41 = vmax.f32 %v240_v42, 0.0  ;;  %v291_v25 = vpop.permute.xlu1 %290 }
  0xbe   :  { %v259_v7 = vmax.f32 %v243_v40, 0.0  ;;  %v258_v11 = vmax.f32 %v242_v43, 0.0  ;;  %522 = vperm.xlu1 %1029, %v1170_v9  }
  0xbf   :  { %336 = vmatprep.subr.mxu0 %v257_v5  ;;  %v279_v34 = vpop.permute.xlu0 %278 }
  0xc0   :  { %425 = vmatprep.subr.mxu1 %v259_v7  ;;  %337 = vmatpush1.msra.mxu0 %v256_v41 }
  0xc1   :  { %426 = vmatpush1.msra.mxu1 %v258_v11  ;;  %986 = vmatmul.mubr.msk.f32.vlgmr.msra.gmra.mxu0 %vm293_vm0, %v273_v12  ;;  %v283_v35 = vpop.permute.xlu1 %282 }
  0xc2   :  { %990 = vmatmul.mubr.msk.f32.vlgmr.msra.gmra.mxu1 %vm293_vm0, %v273_v12  ;;  %376 = vmatprep.mubr.f32.mxu0 %v1126_v10 }
  0xc3   :  { %465 = vmatprep.mubr.f32.mxu1 %v1126_v10 }
  0xc5   :  { %987 = vmatmul.mubr.msk.f32.gmra.mxu0 %vm293_vm0, %v274_v13 }
  0xc6   :  { %991 = vmatmul.mubr.msk.f32.gmra.mxu1 %vm293_vm0, %v274_v13  ;;  %382 = vmatprep.mubr.f32.mxu0 %v1126_v10 }
  0xc7   :  { %471 = vmatprep.mubr.f32.mxu1 %v1126_v10 }
  0xc9   :  { %988 = vmatmul.mubr.msk.f32.gmra.mxu0 %vm293_vm0, %v275_v14 }
  0xca   :  { %992 = vmatmul.mubr.msk.f32.gmra.mxu1 %vm293_vm0, %v275_v14  ;;  %388 = vmatprep.mubr.f32.mxu0 %v1126_v10 }
  0xcb   :  { %477 = vmatprep.mubr.f32.mxu1 %v1126_v10 }
  0xcd   :  { %989 = vmatmul.mubr.msk.f32.gmra.mxu0 %vm293_vm0, %v276_v15 }
  0xce   :  { %993 = vmatmul.mubr.msk.f32.gmra.mxu1 %vm293_vm0, %v276_v15  ;;  %613 = vmatprep.mubr.f32.mxu0 %v1126_v10 }
  0xcf   :  { %702 = vmatprep.mubr.f32.mxu1 %v1126_v10 }
 0x181   :  { %v372_v17 = vpop.f32.mrf.mxu0 }
 0x182   :  { %v461_v18 = vpop.f32.mrf.mxu1  ;;  %v1247_v39 = vadd.f32 %v372_v17, %v279_v34 }
 0x183   :  { %v374_v19 = vpop.f32.mrf.mxu0  ;;  %v462_v61 = vadd.f32 %v461_v18, %v279_v34 }
 0x184   :  { %v463_v20 = vpop.f32.mrf.mxu1  ;;  %v375_v26 = vadd.f32 %v374_v19, %v279_v34  ;;  %v484_v7 = vmul.f32 0.25, %v1247_v39 }
 0x185   :  { %v378_v21 = vpop.f32.mrf.mxu0  ;;  %v464_v57 = vadd.f32 %v463_v20, %v279_v34  ;;  %v486_v14 = vmul.f32 0.25, %v462_v61 }
 0x186   :  { %v467_v22 = vpop.f32.mrf.mxu1  ;;  %v379_v50 = vadd.f32 %v378_v21, %v283_v35  ;;  %v485_v40 = vmul.f32 0.25, %v375_v26  ;;  %v500_v21 = vmax.f32 %v1247_v39, %v484_v7 }
 0x187   :  { %v380_v24 = vpop.f32.mrf.mxu0  ;;  %v468_v53 = vadd.f32 %v467_v22, %v283_v35  ;;  %v487_v11 = vmul.f32 0.25, %v464_v57 }
 0x188   :  { %v469_v30 = vpop.f32.mrf.mxu1  ;;  %v381_v48 = vadd.f32 %v380_v24, %v283_v35  ;;  %v488_v1 = vmul.f32 0.25, %v379_v50  ;;  %v501_v19 = vmax.f32 %v375_v26, %v485_v40  ;;  %v502_v24 = vmax.f32 %v462_v61, %v486_v14 }
 0x189   :  { %v384_v31 = vpop.f32.mrf.mxu0  ;;  %v470_v29 = vadd.f32 %v469_v30, %v283_v35  ;;  %v490_v43 = vmul.f32 0.25, %v468_v53  ;;  %v503_v22 = vmax.f32 %v464_v57, %v487_v11  ;;  %v519_v30 = vld [vmem:[#allocation5 + $0x50] sm:$0xff] }
 0x18a   :  { %v473_v32 = vpop.f32.mrf.mxu1  ;;  %v385_v44 = vadd.f32 %v384_v31, %v287_v23  ;;  %v489_v62 = vmul.f32 0.25, %v381_v48  ;;  %v504_v17 = vmax.f32 %v379_v50, %v488_v1  ;;  %v520_v31 = vld [vmem:[#allocation5 + $0x58] sm:$0xff] }
 0x18b   :  { %v386_v33 = vpop.f32.mrf.mxu0  ;;  %v474_v28 = vadd.f32 %v473_v32, %v287_v23  ;;  %v491_v3 = vmul.f32 0.25, %v470_v29  ;;  %v506_v20 = vmax.f32 %v468_v53, %v490_v43  ;;  %v1128_v32 = vmov 3  }
 0x18c   :  { %v475_v2 = vpop.f32.mrf.mxu1  ;;  %v387_v36 = vadd.f32 %v386_v33, %v287_v23  ;;  %v492_v58 = vmul.f32 0.25, %v385_v44  ;;  %v505_v15 = vmax.f32 %v381_v48, %v489_v62  ;;  %1031 = vset.pattern.permute.xlu0 %v1128_v32  ;;  %1032 = vset.pattern.permute.xlu1 %v1128_v32  ;;  %v535_v33 = vpop.permute.xlu1 %534 }
 0x18d   :  { %v390_v6 = vpop.f32.mrf.mxu0  ;;  %v476_v45 = vadd.f32 %v475_v2, %v287_v23  ;;  %v494_v63 = vmul.f32 0.25, %v474_v28  ;;  %v507_v18 = vmax.f32 %v470_v29, %v491_v3  ;;  %v517_v23 = vld [vmem:[#allocation5 + $0x40] sm:$0xff]  ;;  %765 = vperm.xlu0 %1031, %v1170_v9   ;;  %769 = vperm.xlu1 %1032, %v1167_v8   ;;  %v531_v48 = vpop.permute.xlu0 %530 }
 0x18e   :  { %v391_v37 = vadd.f32 %v390_v6, %v291_v25  ;;  %v479_v38 = vpop.f32.mrf.mxu1  ;;  %v493_v54 = vmul.f32 0.25, %v387_v36  ;;  %v508_v12 = vmax.f32 %v385_v44, %v492_v58 }
 0x18f   :  { %v480_v46 = vadd.f32 %v479_v38, %v291_v25  ;;  %v392_v47 = vpop.f32.mrf.mxu0  ;;  %v495_v59 = vmul.f32 0.25, %v476_v45  ;;  %v510_v16 = vmax.f32 %v474_v28, %v494_v63 }
 0x190   :  { %v393_v49 = vadd.f32 %v392_v47, %v291_v25  ;;  %v481_v27 = vpop.f32.mrf.mxu1  ;;  %v496_v51 = vmul.f32 0.25, %v391_v37  ;;  %v509_v5 = vmax.f32 %v387_v36, %v493_v54  ;;  %v527_v36 = vpop.permute.xlu1 %526 }
 0x191   :  { %v482_v52 = vadd.f32 %v481_v27, %v291_v25  ;;  %v498_v55 = vmul.f32 0.25, %v480_v46  ;;  %v511_v13 = vmax.f32 %v476_v45, %v495_v59  ;;  %v518_v25 = vld [vmem:[#allocation5 + $0x48] sm:$0xff] }
 0x192   :  { %v497_v56 = vmul.f32 0.25, %v393_v49  ;;  %v512_v4 = vmax.f32 %v391_v37, %v496_v51 }
 0x193   :  { %v499_v60 = vmul.f32 0.25, %v482_v52  ;;  %v514_v41 = vmax.f32 %v480_v46, %v498_v55 }
 0x194   :  { %v513_v0 = vmax.f32 %v393_v49, %v497_v56  ;;  %v523_v47 = vpop.permute.xlu1 %522 }
 0x195   :  { %v515_v42 = vmax.f32 %v482_v52, %v499_v60 }
 0x196   :  { %573 = vmatprep.subr.mxu0 %v513_v0 }
 0x197   :  { %662 = vmatprep.subr.mxu1 %v515_v42  ;;  %574 = vmatpush1.msra.mxu0 %v512_v4 }
 0x198   :  { %663 = vmatpush1.msra.mxu1 %v514_v41  ;;  %575 = vmatprep.subr.mxu0 %v509_v5 }
 0x199   :  { %664 = vmatprep.subr.mxu1 %v511_v13  ;;  %576 = vmatpush1.msra.mxu0 %v508_v12 }
 0x19a   :  { %665 = vmatpush1.msra.mxu1 %v510_v16  ;;  %577 = vmatprep.subr.mxu0 %v505_v15 }
 0x19b   :  { %666 = vmatprep.subr.mxu1 %v507_v18  ;;  %578 = vmatpush1.msra.mxu0 %v504_v17 }
 0x19c   :  { %667 = vmatpush1.msra.mxu1 %v506_v20  ;;  %579 = vmatprep.subr.mxu0 %v501_v19 }
 0x19d   :  { %668 = vmatprep.subr.mxu1 %v503_v22  ;;  %580 = vmatpush1.msra.mxu0 %v500_v21 }
 0x19e   :  { %669 = vmatpush1.msra.mxu1 %v502_v24  ;;  %994 = vmatmul.mubr.msk.f32.vlgmr.msra.gmra.mxu0 %vm293_vm0, %v517_v23 }
 0x19f   :  { %998 = vmatmul.mubr.msk.f32.vlgmr.msra.gmra.mxu1 %vm293_vm0, %v517_v23  ;;  %619 = vmatprep.mubr.f32.mxu0 %v1126_v10 }
 0x1a0   :  { %708 = vmatprep.mubr.f32.mxu1 %v1126_v10 }
 0x1a2   :  { %995 = vmatmul.mubr.msk.f32.gmra.mxu0 %vm293_vm0, %v518_v25 }
 0x1a3   :  { %999 = vmatmul.mubr.msk.f32.gmra.mxu1 %vm293_vm0, %v518_v25  ;;  %625 = vmatprep.mubr.f32.mxu0 %v1126_v10 }
 0x1a4   :  { %714 = vmatprep.mubr.f32.mxu1 %v1126_v10 }
 0x1a6   :  { %996 = vmatmul.mubr.msk.f32.gmra.mxu0 %vm293_vm0, %v519_v30 }
 0x1a7   :  { %1000 = vmatmul.mubr.msk.f32.gmra.mxu1 %vm293_vm0, %v519_v30  ;;  %631 = vmatprep.mubr.f32.mxu0 %v1126_v10 }
 0x1a8   :  { %720 = vmatprep.mubr.f32.mxu1 %v1126_v10 }
 0x1aa   :  { %997 = vmatmul.mubr.msk.f32.gmra.mxu0 %vm293_vm0, %v520_v31 }
 0x1ab   :  { %1001 = vmatmul.mubr.msk.f32.gmra.mxu1 %vm293_vm0, %v520_v31  ;;  %854 = vmatprep.mubr.f32.mxu0 %v1126_v10 }
 0x1ac   :  { %939 = vmatprep.mubr.f32.mxu1 %v1126_v10 }
 0x25e   :  { %v615_v2 = vpop.f32.mrf.mxu0 }
 0x25f   :  { %v704_v34 = vpop.f32.mrf.mxu1  ;;  %v1269_v50 = vadd.f32 %v615_v2, %v523_v47 }
 0x260   :  { %v617_v6 = vpop.f32.mrf.mxu0  ;;  %v705_v5 = vadd.f32 %v704_v34, %v523_v47 }
 0x261   :  { %v706_v35 = vpop.f32.mrf.mxu1  ;;  %v618_v54 = vadd.f32 %v617_v6, %v523_v47  ;;  %v727_v20 = vmul.f32 0.25, %v1269_v50 }
 0x262   :  { %v621_v37 = vpop.f32.mrf.mxu0  ;;  %v707_v4 = vadd.f32 %v706_v35, %v523_v47  ;;  %v729_v24 = vmul.f32 0.25, %v705_v5  ;;  %v760_v35 = vld [vmem:[#allocation5 + $0x60] sm:$0xff] }
 0x263   :  { %v710_v38 = vpop.f32.mrf.mxu1  ;;  %v622_v59 = vadd.f32 %v621_v37, %v527_v36  ;;  %v728_v16 = vmul.f32 0.25, %v618_v54  ;;  %v743_v34 = vmax.f32 %v1269_v50, %v727_v20  ;;  %v761_v37 = vld [vmem:[#allocation5 + $0x68] sm:$0xff] }
 0x264   :  { %v623_v39 = vpop.f32.mrf.mxu0  ;;  %v711_v63 = vadd.f32 %v710_v38, %v527_v36  ;;  %v730_v21 = vmul.f32 0.25, %v707_v4  ;;  %v762_v38 = vld [vmem:[#allocation5 + $0x70] sm:$0xff] }
 0x265   :  { %v712_v44 = vpop.f32.mrf.mxu1  ;;  %v624_v55 = vadd.f32 %v623_v39, %v527_v36  ;;  %v731_v12 = vmul.f32 0.25, %v622_v59  ;;  %v763_v39 = vld [vmem:[#allocation5 + $0x78] sm:$0xff] }
 0x266   :  { %v627_v45 = vpop.f32.mrf.mxu0  ;;  %v713_v60 = vadd.f32 %v712_v44, %v527_v36  ;;  %v733_v17 = vmul.f32 0.25, %v711_v63  ;;  %v746_v6 = vmax.f32 %v707_v4, %v730_v21  ;;  %v745_v36 = vmax.f32 %v705_v5, %v729_v24  ;;  %v766_v44 = vpop.permute.xlu0 %765 }
 0x267   :  { %v716_v46 = vpop.f32.mrf.mxu1  ;;  %v628_v29 = vadd.f32 %v627_v45, %v531_v48  ;;  %v732_v41 = vmul.f32 0.25, %v624_v55  ;;  %v747_v31 = vmax.f32 %v622_v59, %v731_v12 }
 0x268   :  { %v629_v26 = vpop.f32.mrf.mxu0  ;;  %v717_v56 = vadd.f32 %v716_v46, %v531_v48  ;;  %v734_v13 = vmul.f32 0.25, %v713_v60  ;;  %v749_v2 = vmax.f32 %v711_v63, %v733_v17 }
 0x269   :  { %v718_v28 = vpop.f32.mrf.mxu1  ;;  %v630_v9 = vadd.f32 %v629_v26, %v531_v48  ;;  %v735_v42 = vmul.f32 0.25, %v628_v29  ;;  %v748_v25 = vmax.f32 %v624_v55, %v732_v41 }
 0x26a   :  { %v633_v49 = vpop.f32.mrf.mxu0  ;;  %v719_v51 = vadd.f32 %v718_v28, %v531_v48  ;;  %v737_v7 = vmul.f32 0.25, %v717_v56  ;;  %v750_v32 = vmax.f32 %v713_v60, %v734_v13  ;;  %v770_v28 = vpop.permute.xlu1 %769 }
 0x26b   :  { %v634_v27 = vadd.f32 %v633_v49, %v535_v33  ;;  %v722_v8 = vpop.f32.mrf.mxu1  ;;  %v736_v0 = vmul.f32 0.25, %v630_v9  ;;  %v751_v22 = vmax.f32 %v628_v29, %v735_v42 }
 0x26c   :  { %v723_v52 = vadd.f32 %v722_v8, %v535_v33  ;;  %v635_v53 = vpop.f32.mrf.mxu0  ;;  %v738_v40 = vmul.f32 0.25, %v719_v51  ;;  %v753_v30 = vmax.f32 %v717_v56, %v737_v7 }
 0x26d   :  { %v636_v57 = vadd.f32 %v635_v53, %v535_v33  ;;  %v724_v58 = vpop.f32.mrf.mxu1  ;;  %v739_v61 = vmul.f32 0.25, %v634_v27  ;;  %v752_v18 = vmax.f32 %v630_v9, %v736_v0 }
 0x26e   :  { %v725_v62 = vadd.f32 %v724_v58, %v535_v33  ;;  %v741_v1 = vmul.f32 0.25, %v723_v52  ;;  %v754_v23 = vmax.f32 %v719_v51, %v738_v40  ;;  %v744_v33 = vmax.f32 %v618_v54, %v728_v16 }
 0x26f   :  { %v740_v3 = vmul.f32 0.25, %v636_v57  ;;  %v755_v14 = vmax.f32 %v634_v27, %v739_v61 }
 0x270   :  { %v742_v43 = vmul.f32 0.25, %v725_v62  ;;  %v757_v19 = vmax.f32 %v723_v52, %v741_v1 }
 0x271   :  { %v756_v11 = vmax.f32 %v636_v57, %v740_v3 }
 0x272   :  { %v758_v15 = vmax.f32 %v725_v62, %v742_v43 }
 0x273   :  { %814 = vmatprep.subr.mxu0 %v756_v11 }
 0x274   :  { %899 = vmatprep.subr.mxu1 %v758_v15  ;;  %815 = vmatpush1.msra.mxu0 %v755_v14 }
 0x275   :  { %900 = vmatpush1.msra.mxu1 %v757_v19  ;;  %816 = vmatprep.subr.mxu0 %v752_v18 }
 0x276   :  { %901 = vmatprep.subr.mxu1 %v754_v23  ;;  %817 = vmatpush1.msra.mxu0 %v751_v22 }
 0x277   :  { %902 = vmatpush1.msra.mxu1 %v753_v30  ;;  %818 = vmatprep.subr.mxu0 %v748_v25 }
 0x278   :  { %903 = vmatprep.subr.mxu1 %v750_v32  ;;  %819 = vmatpush1.msra.mxu0 %v747_v31 }
 0x279   :  { %904 = vmatpush1.msra.mxu1 %v749_v2  ;;  %820 = vmatprep.subr.mxu0 %v744_v33 }
 0x27a   :  { %905 = vmatprep.subr.mxu1 %v746_v6  ;;  %821 = vmatpush1.msra.mxu0 %v743_v34 }
 0x27b   :  { %906 = vmatpush1.msra.mxu1 %v745_v36  ;;  %1002 = vmatmul.mubr.msk.f32.vlgmr.msra.gmra.mxu0 %vm293_vm0, %v760_v35 }
 0x27c   :  { %1006 = vmatmul.mubr.msk.f32.vlgmr.msra.gmra.mxu1 %vm293_vm0, %v760_v35  ;;  %860 = vmatprep.mubr.f32.mxu0 %v1126_v10 }
 0x27d   :  { %945 = vmatprep.mubr.f32.mxu1 %v1126_v10 }
 0x27f   :  { %1003 = vmatmul.mubr.msk.f32.gmra.mxu0 %vm293_vm0, %v761_v37 }
 0x280   :  { %1007 = vmatmul.mubr.msk.f32.gmra.mxu1 %vm293_vm0, %v761_v37  ;;  %866 = vmatprep.mubr.f32.mxu0 %v1126_v10 }
 0x281   :  { %951 = vmatprep.mubr.f32.mxu1 %v1126_v10 }
 0x283   :  { %1004 = vmatmul.mubr.msk.f32.gmra.mxu0 %vm293_vm0, %v762_v38 }
 0x284   :  { %1008 = vmatmul.mubr.msk.f32.gmra.mxu1 %vm293_vm0, %v762_v38  ;;  %870 = vmatprep.mubr.f32.mxu0 %v1126_v10 }
 0x285   :  { %955 = vmatprep.mubr.f32.mxu1 %v1126_v10 }
 0x287   :  { %1005 = vmatmul.mubr.msk.f32.gmra.mxu0 %vm293_vm0, %v763_v39 }
 0x288   :  { %1009 = vmatmul.mubr.msk.f32.gmra.mxu1 %vm293_vm0, %v763_v39 }
 0x33b   :  { %v856_v45 = vpop.f32.mrf.mxu0 }
 0x33c   :  { %v941_v46 = vpop.f32.mrf.mxu1  ;;  %v857_v47 = vadd.f32 %v856_v45, %v766_v44 }
 0x33d   :  { %v942_v26 = vadd.f32 %v941_v46, %v766_v44  ;;  %v858_v48 = vpop.f32.mrf.mxu0 }
 0x33e   :  { %960 = vst [vmem:[#allocation8] sm:$0xff] %v857_v47  ;;  %v859_v49 = vadd.f32 %v858_v48, %v766_v44  ;;  %v943_v9 = vpop.f32.mrf.mxu1 }
 0x33f   :  { %962 = vst [vmem:[#allocation8 + $0x10] sm:$0xff] %v942_v26  ;;  %v944_v27 = vadd.f32 %v943_v9, %v766_v44  ;;  %v862_v8 = vpop.f32.mrf.mxu0 }
 0x340   :  { %961 = vst [vmem:[#allocation8 + $0x8] sm:$0xff] %v859_v49  ;;  %v947_v10 = vpop.f32.mrf.mxu1  ;;  %v863_v50 = vadd.f32 %v862_v8, %v770_v28 }
 0x341   :  { %963 = vst [vmem:[#allocation8 + $0x18] sm:$0xff] %v944_v27  ;;  %v948_v29 = vadd.f32 %v947_v10, %v770_v28  ;;  %v864_v51 = vpop.f32.mrf.mxu0 }
 0x342   :  { %964 = vst [vmem:[#allocation8 + $0x20] sm:$0x3] %v863_v50  ;;  %v865_v52 = vadd.f32 %v864_v51, %v770_v28  ;;  %v949_v53 = vpop.f32.mrf.mxu1 }
 0x343   :  { %966 = vst [vmem:[#allocation8 + $0x30] sm:$0x3] %v948_v29  ;;  %v950_v54 = vadd.f32 %v949_v53, %v770_v28  ;;  %v868_v55 = vpop.f32.mrf.mxu0 }
 0x344   :  { %965 = vst [vmem:[#allocation8 + $0x28] sm:$0x3] %v865_v52  ;;  %v953_v56 = vpop.f32.mrf.mxu1 }
 0x345   :  { %967 = vst [vmem:[#allocation8 + $0x38] sm:$0x3] %v950_v54  ;;  %v869_v57 = vpop.f32.mrf.mxu0 }
 0x346   :  { %v954_v58 = vpop.f32.mrf.mxu1 }
 0x347   :  { %1104 = shalt.err (!%p1101_p5)
}
 0x348   :  { %s1130_s29 = smov 512   ;;  %s1131_s30 = smov 32   ;;  %v872_v59 = vpop.f32.mrf.mxu0  ;;  %v957_v60 = vpop.f32.mrf.mxu1 }
 0x349   :  { %979 = dma.vmem_to_hbm [thread:$0]  %s974_s2, 1024, %s1293_s3, [#allocation4], %s1130_s29, %s1130_s29, %s1131_s30  }
 0x34a   :  { %v873_v61 = vpop.f32.mrf.mxu0  ;;  %v958_v62 = vpop.f32.mrf.mxu1 }
 0x34b   :  { %1117 = dma.done.wait [#allocation4], 1024  }
 0x34c   :  { %1118 = vsyncadd [#allocation4], 4294966272 }
 0x34d   :  { %983 = vsyncpa [#allocation3], 1 }
 0x34e   :  { %984 = vsyncpa [#allocation6], 1 }
 0x34f   :  { %985 = vsyncpa [#allocation4], 1 }

</bundles_post_ra>
